<compile_context>
chip_gen: v7x
topology: tpu7x:2x2x1
jax: 0.10.0
libtpu: 0.0.40
codegen_flags: <defaults>
</compile_context>

<pallas_src>
import jax
import jax.numpy as jnp
from jax.experimental import pallas as pl
from jax.experimental.pallas import tpu as pltpu


def _conv_weight_matrix(w_oihw, W):
    """Banded matmul matrix for a 3x3 / stride-1 / pad-1 conv on row-pairs.

    Returns R of shape (4*W*C, 2*W*C).  With the LHS row for row-pair hh laid
    out as 4 lane-blocks of W*C holding image rows (2hh-1, 2hh, 2hh+1, 2hh+2)
    (zeros outside the image), LHS @ R is the conv output for rows (2hh, 2hh+1)
    flattened as [hl*W*C + w*C + co].
    """
    C = w_oihw.shape[1]
    wt = jnp.transpose(w_oihw, (2, 3, 1, 0))              # (ky, kx, ci, co)
    ws = jnp.arange(W)[:, None]                           # source column
    wd = jnp.arange(W)[None, :]                           # destination column
    kx = ws - wd + 1
    kx_ok = ((kx >= 0) & (kx < 3)).astype(wt.dtype)       # (W, W)
    kx_cl = jnp.clip(kx, 0, 2)
    row_blocks = []
    for dyb in range(4):                                  # LHS block: image row 2hh + dyb - 1
        col_blocks = []
        for hl in range(2):                               # output row 2hh + hl
            ky = dyb - hl
            if 0 <= ky <= 2:
                blk = wt[ky][kx_cl] * kx_ok[:, :, None, None]      # (W, W, C, C)
                blk = jnp.transpose(blk, (0, 2, 1, 3)).reshape(W * C, W * C)
            else:
                blk = jnp.zeros((W * C, W * C), wt.dtype)
            col_blocks.append(blk)
        row_blocks.append(jnp.concatenate(col_blocks, axis=1))
    return jnp.concatenate(row_blocks, axis=0)            # (4*W*C, 2*W*C)


def _pick_images_per_step(N, Hh):
    # Pack several images per grid step to amortize per-step overhead, but keep
    # >= 2 steps when N allows (both TensorCores get work on the parallel axis).
    # (Nb*Hh) must be sublane(8)-divisible unless the block spans all rows.
    for nb in (8, 4, 2):
        if N % nb == 0 and N // nb >= 2 and (nb * Hh) % 8 == 0:
            return nb
    return N


def basic_block_forward(x_nchw, w1_oihw, s1, b1, w2_oihw, s2, b2):
    """x_nchw: (N, C, H, W) float32.  Returns (N, C, H, W) float32."""
    N, C, H, W = x_nchw.shape
    Cout = w1_oihw.shape[0]
    assert C == Cout, "downsample=None requires in_channels == out_channels"
    assert H % 2 == 0, "row-pair packing requires an even image height"
    Hh = H // 2
    WC = W * C
    LW = 2 * WC                         # lane width of one row-pair (128 at test shape)
    Nb = _pick_images_per_step(N, Hh)
    M = Nb * Hh                         # matmul rows per grid step

    # NCHW -> NHWC -> (N*H/2, 2*W*C): one lane-dense row per image row-pair.
    x_rows = jnp.transpose(x_nchw, (0, 2, 3, 1)).reshape(N * Hh, LW)

    r1 = _conv_weight_matrix(w1_oihw, W).astype(jnp.bfloat16)
    r2 = _conv_weight_matrix(w2_oihw, W).astype(jnp.bfloat16)
    s1r = jnp.tile(s1.astype(jnp.float32), 2 * W).reshape(1, LW)
    b1r = jnp.tile(b1.astype(jnp.float32), 2 * W).reshape(1, LW)
    s2r = jnp.tile(s2.astype(jnp.float32), 2 * W).reshape(1, LW)
    b2r = jnp.tile(b2.astype(jnp.float32), 2 * W).reshape(1, LW)

    def kernel(x_ref, r1_ref, s1_ref, b1_ref, r2_ref, s2_ref, b2_ref,
               o_ref, scr_ref):
        # x_ref  : (M, 2*WC)   f32  row-pair rows (also the residual)
        # r1/r2  : (4*WC, 2*WC) bf16 banded conv matrices
        # s*/b*  : (1, 2*WC)   f32  folded BN scale / bias (tiled per lane)
        # o_ref  : (M, 2*WC)   f32
        # scr_ref: (M, 4*WC)   bf16 dy-shifted rows (matmul LHS), reused by both convs

        def scatter(a):
            # a: (M, 2*WC) value in row-pair layout (lanes [0,WC) = even image
            # row, [WC,2WC) = odd row).  Write the 4 dy-shifted copies forming
            # the matmul LHS.  Every scratch element is written -> no stale reads.
            a = a.astype(scr_ref.dtype)
            even = a[:, 0:WC]                        # image rows 2*hh
            odd = a[:, WC:2 * WC]                    # image rows 2*hh + 1
            zrow = jnp.zeros((1, WC), scr_ref.dtype)
            scr_ref[:, WC:2 * WC] = even             # block dyb=1: row 2*hh
            scr_ref[:, 2 * WC:3 * WC] = odd          # block dyb=2: row 2*hh + 1
            # block dyb=0: row 2*hh - 1 ; block dyb=3: row 2*hh + 2 (one-group
            # shifts; image-boundary rows are the zero padding, fixed up below).
            scr_ref[:, 0:WC] = jnp.concatenate([zrow, odd[:M - 1]], axis=0)
            scr_ref[:, 3 * WC:4 * WC] = jnp.concatenate([even[1:], zrow], axis=0)
            for nl in range(Nb):                     # static loop over images
                scr_ref[nl * Hh:nl * Hh + 1, 0:WC] = zrow
                scr_ref[(nl + 1) * Hh - 1:(nl + 1) * Hh, 3 * WC:4 * WC] = zrow

        # ---- conv1 (one MXU matmul) + folded bn1 + relu (f32 VPU math) ----
        scatter(x_ref[...])
        h = jnp.dot(scr_ref[...], r1_ref[...], preferred_element_type=jnp.float32)
        h = jnp.maximum(h * s1_ref[...] + b1_ref[...], 0.0)

        # ---- conv2 + folded bn2 + residual add + relu ----
        scatter(h)
        h = jnp.dot(scr_ref[...], r2_ref[...], preferred_element_type=jnp.float32)
        # Residual re-read at point of use (block is VMEM-resident); not kept
        # live across the matmuls.
        out = h * s2_ref[...] + b2_ref[...] + x_ref[...]
        o_ref[...] = jnp.maximum(out, 0.0).astype(o_ref.dtype)

    out_rows = pl.pallas_call(
        kernel,
        out_shape=jax.ShapeDtypeStruct((N * Hh, LW), jnp.float32),
        grid=(N // Nb,),
        in_specs=[
            pl.BlockSpec((M, LW), lambda g: (g, 0)),        # x row-pairs
            pl.BlockSpec((4 * WC, LW), lambda g: (0, 0)),   # R1
            pl.BlockSpec((1, LW), lambda g: (0, 0)),        # s1
            pl.BlockSpec((1, LW), lambda g: (0, 0)),        # b1
            pl.BlockSpec((4 * WC, LW), lambda g: (0, 0)),   # R2
            pl.BlockSpec((1, LW), lambda g: (0, 0)),        # s2
            pl.BlockSpec((1, LW), lambda g: (0, 0)),        # b2
        ],
        out_specs=pl.BlockSpec((M, LW), lambda g: (g, 0)),
        scratch_shapes=[pltpu.VMEM((M, 4 * WC), jnp.bfloat16)],
        compiler_params=pltpu.CompilerParams(
            dimension_semantics=("parallel",),
            # Well under the v7x 64 MiB physical VMEM; v5e/v6e have headroom.
            vmem_limit_bytes=32 * 1024 * 1024),
    )(x_rows, r1, s1r, b1r, r2, s2r, b2r)

    # (N*H/2, 2*W*C) -> NHWC -> NCHW
    return jnp.transpose(out_rows.reshape(N, H, W, C), (0, 3, 1, 2))


def _reference(x, w1, g1, be1, m1, v1, w2, g2, be2, m2, v2, eps=1e-5):
    """Plain-JAX (XLA, full f32) reference matching PyTorch eval-mode BasicBlock."""
    def conv(a, w):
        return jax.lax.conv_general_dilated(
            a, w, window_strides=(1, 1), padding=((1, 1), (1, 1)),
            dimension_numbers=("NCHW", "OIHW", "NCHW"))

    def bn(a, g, b, m, v):
        sh = (1, -1, 1, 1)
        return (a - m.reshape(sh)) / jnp.sqrt(v.reshape(sh) + eps) \
            * g.reshape(sh) + b.reshape(sh)

    out = jnp.maximum(bn(conv(x, w1), g1, be1, m1, v1), 0.0)
    out = bn(conv(out, w2), g2, be2, m2, v2) + x
    return jnp.maximum(out, 0.0)


if __name__ == "__main__":
    N, C, H, W = 2, 4, 16, 16
    eps = 1e-5

    key = jax.random.PRNGKey(0)
    keys = jax.random.split(key, 11)

    x = jax.random.normal(keys[0], (N, C, H, W), jnp.float32)

    # conv weights (PyTorch OIHW layout), no bias
    w1 = 0.1 * jax.random.normal(keys[1], (C, C, 3, 3), jnp.float32)
    w2 = 0.1 * jax.random.normal(keys[2], (C, C, 3, 3), jnp.float32)

    # BatchNorm parameters (inference / running stats), deterministic
    g1 = jax.random.uniform(keys[3], (C,), jnp.float32, 0.5, 1.5)
    be1 = 0.1 * jax.random.normal(keys[4], (C,), jnp.float32)
    m1 = 0.1 * jax.random.normal(keys[5], (C,), jnp.float32)
    v1 = jax.random.uniform(keys[6], (C,), jnp.float32, 0.5, 1.5)

    g2 = jax.random.uniform(keys[7], (C,), jnp.float32, 0.5, 1.5)
    be2 = 0.1 * jax.random.normal(keys[8], (C,), jnp.float32)
    m2 = 0.1 * jax.random.normal(keys[9], (C,), jnp.float32)
    v2 = jax.random.uniform(keys[10], (C,), jnp.float32, 0.5, 1.5)

    # Fold BN into per-channel scale/bias: y = x*scale + bias
    s1 = g1 / jnp.sqrt(v1 + eps)
    b1 = be1 - m1 * s1
    s2 = g2 / jnp.sqrt(v2 + eps)
    b2 = be2 - m2 * s2

    out = jax.jit(basic_block_forward)(x, w1, s1, b1, w2, s2, b2)
    out = jax.block_until_ready(out)

    ref = _reference(x, w1, g1, be1, m1, v1, w2, g2, be2, m2, v2, eps)
    assert out.shape == (N, C, H, W)
    # Tolerance accounts for bf16 MXU operands / bf16 intermediate (f32 accum);
    # typical max abs error here is ~1e-2 against the full-f32 reference.
    err = jnp.max(jnp.abs(out - ref))
    assert jnp.allclose(out, ref, atol=5e-2, rtol=5e-2), f"max err {err}"

    print("KERNEL_OK")
</pallas_src>

<mosaic_0001>
module attributes {stable_mosaic.version = 11 : i64} {
  func.func @kernel(%arg0: i32, %arg1: memref<16x128xf32, #tpu.memory_space<vmem>>, %arg2: memref<256x128xbf16, #tpu.memory_space<vmem>>, %arg3: memref<1x128xf32, #tpu.memory_space<vmem>>, %arg4: memref<1x128xf32, #tpu.memory_space<vmem>>, %arg5: memref<256x128xbf16, #tpu.memory_space<vmem>>, %arg6: memref<1x128xf32, #tpu.memory_space<vmem>>, %arg7: memref<1x128xf32, #tpu.memory_space<vmem>>, %arg8: memref<16x128xf32, #tpu.memory_space<vmem>>, %arg9: memref<16x256xbf16, #tpu.memory_space<vmem>>) attributes {dimension_semantics = [#tpu.dimension_semantics<parallel>], iteration_bounds = array<i64: 1>, scalar_prefetch = 0 : i64, scratch_operands = 1 : i64, tpu.core_type = #tpu.core_type<tc>, window_params = [{transform_indices = @transform_0, window_bounds = array<i64: 16, 128>}, {pipeline_mode = #tpu.pipeline_mode<synchronous>, transform_indices = @transform_1, window_bounds = array<i64: 256, 128>}, {pipeline_mode = #tpu.pipeline_mode<synchronous>, transform_indices = @transform_2, window_bounds = array<i64: 1, 128>}, {pipeline_mode = #tpu.pipeline_mode<synchronous>, transform_indices = @transform_3, window_bounds = array<i64: 1, 128>}, {pipeline_mode = #tpu.pipeline_mode<synchronous>, transform_indices = @transform_4, window_bounds = array<i64: 256, 128>}, {pipeline_mode = #tpu.pipeline_mode<synchronous>, transform_indices = @transform_5, window_bounds = array<i64: 1, 128>}, {pipeline_mode = #tpu.pipeline_mode<synchronous>, transform_indices = @transform_6, window_bounds = array<i64: 1, 128>}, {transform_indices = @transform_7, window_bounds = array<i64: 16, 128>}]} {
    %c0 = arith.constant 0 : index
    %c0_0 = arith.constant 0 : index
    %0 = vector.load %arg1[%c0, %c0_0] : memref<16x128xf32, #tpu.memory_space<vmem>>, vector<16x128xf32>
    %1 = arith.truncf %0 : vector<16x128xf32> to vector<16x128xbf16>
    %2 = vector.extract_strided_slice %1 {offsets = [0, 0], sizes = [16, 64], strides = [1, 1]} : vector<16x128xbf16> to vector<16x64xbf16>
    %3 = vector.extract_strided_slice %1 {offsets = [0, 64], sizes = [16, 64], strides = [1, 1]} : vector<16x128xbf16> to vector<16x64xbf16>
    %cst = arith.constant 0.000000e+00 : bf16
    %4 = vector.broadcast %cst : bf16 to vector<1x64xbf16>
    %c0_1 = arith.constant 0 : index
    %c64 = arith.constant 64 : index
    %5 = vector.load %arg9[%c0_1, %c64] : memref<16x256xbf16, #tpu.memory_space<vmem>>, vector<16x64xbf16>
    tpu.vector_store %arg9[%c0_1, %c64], %2 {strides = array<i32>} : memref<16x256xbf16, #tpu.memory_space<vmem>>, vector<16x64xbf16>,
    %c0_2 = arith.constant 0 : index
    %c128 = arith.constant 128 : index
    %6 = vector.load %arg9[%c0_2, %c128] : memref<16x256xbf16, #tpu.memory_space<vmem>>, vector<16x64xbf16>
    tpu.vector_store %arg9[%c0_2, %c128], %3 {strides = array<i32>} : memref<16x256xbf16, #tpu.memory_space<vmem>>, vector<16x64xbf16>,
    %7 = vector.extract_strided_slice %3 {offsets = [0, 0], sizes = [15, 64], strides = [1, 1]} : vector<16x64xbf16> to vector<15x64xbf16>
    %8 = tpu.concatenate %4, %7 in 0 : vector<1x64xbf16>, vector<15x64xbf16> -> vector<16x64xbf16>
    %c0_3 = arith.constant 0 : index
    %c0_4 = arith.constant 0 : index
    %9 = vector.load %arg9[%c0_3, %c0_4] : memref<16x256xbf16, #tpu.memory_space<vmem>>, vector<16x64xbf16>
    tpu.vector_store %arg9[%c0_3, %c0_4], %8 {strides = array<i32>} : memref<16x256xbf16, #tpu.memory_space<vmem>>, vector<16x64xbf16>,
    %10 = vector.extract_strided_slice %2 {offsets = [1, 0], sizes = [15, 64], strides = [1, 1]} : vector<16x64xbf16> to vector<15x64xbf16>
    %11 = tpu.concatenate %10, %4 in 0 : vector<15x64xbf16>, vector<1x64xbf16> -> vector<16x64xbf16>
    %c0_5 = arith.constant 0 : index
    %c192 = arith.constant 192 : index
    %12 = vector.load %arg9[%c0_5, %c192] : memref<16x256xbf16, #tpu.memory_space<vmem>>, vector<16x64xbf16>
    tpu.vector_store %arg9[%c0_5, %c192], %11 {strides = array<i32>} : memref<16x256xbf16, #tpu.memory_space<vmem>>, vector<16x64xbf16>,
    %c0_6 = arith.constant 0 : index
    %c0_7 = arith.constant 0 : index
    %13 = vector.load %arg9[%c0_6, %c0_7] : memref<16x256xbf16, #tpu.memory_space<vmem>>, vector<1x64xbf16>
    tpu.vector_store %arg9[%c0_6, %c0_7], %4 {strides = array<i32>} : memref<16x256xbf16, #tpu.memory_space<vmem>>, vector<1x64xbf16>,
    %c7 = arith.constant 7 : index
    %c192_8 = arith.constant 192 : index
    %14 = vector.load %arg9[%c7, %c192_8] : memref<16x256xbf16, #tpu.memory_space<vmem>>, vector<1x64xbf16>
    tpu.vector_store %arg9[%c7, %c192_8], %4 {strides = array<i32>} : memref<16x256xbf16, #tpu.memory_space<vmem>>, vector<1x64xbf16>,
    %c8 = arith.constant 8 : index
    %c0_9 = arith.constant 0 : index
    %15 = vector.load %arg9[%c8, %c0_9] : memref<16x256xbf16, #tpu.memory_space<vmem>>, vector<1x64xbf16>
    tpu.vector_store %arg9[%c8, %c0_9], %4 {strides = array<i32>} : memref<16x256xbf16, #tpu.memory_space<vmem>>, vector<1x64xbf16>,
    %c15 = arith.constant 15 : index
    %c192_10 = arith.constant 192 : index
    %16 = vector.load %arg9[%c15, %c192_10] : memref<16x256xbf16, #tpu.memory_space<vmem>>, vector<1x64xbf16>
    tpu.vector_store %arg9[%c15, %c192_10], %4 {strides = array<i32>} : memref<16x256xbf16, #tpu.memory_space<vmem>>, vector<1x64xbf16>,
    %c0_11 = arith.constant 0 : index
    %c0_12 = arith.constant 0 : index
    %17 = vector.load %arg9[%c0_11, %c0_12] : memref<16x256xbf16, #tpu.memory_space<vmem>>, vector<16x256xbf16>
    %c0_13 = arith.constant 0 : index
    %c0_14 = arith.constant 0 : index
    %18 = vector.load %arg2[%c0_13, %c0_14] : memref<256x128xbf16, #tpu.memory_space<vmem>>, vector<256x128xbf16>
    %cst_15 = arith.constant dense<0.000000e+00> : vector<16x128xf32>
    %19 = tpu.matmul %17, %18, %cst_15 {dimension_numbers = #tpu.dot_dimension_numbers<[1], [0], [0], [1], [0, 0, 1, 1], [], []>} : vector<16x256xbf16>, vector<256x128xbf16>, vector<16x128xf32> -> vector<16x128xf32>
    %c0_16 = arith.constant 0 : index
    %c0_17 = arith.constant 0 : index
    %20 = vector.load %arg3[%c0_16, %c0_17] : memref<1x128xf32, #tpu.memory_space<vmem>>, vector<1x128xf32>
    %21 = vector.broadcast %20 : vector<1x128xf32> to vector<16x128xf32>
    %22 = arith.mulf %19, %21 : vector<16x128xf32>
    %c0_18 = arith.constant 0 : index
    %c0_19 = arith.constant 0 : index
    %23 = vector.load %arg4[%c0_18, %c0_19] : memref<1x128xf32, #tpu.memory_space<vmem>>, vector<1x128xf32>
    %24 = vector.broadcast %23 : vector<1x128xf32> to vector<16x128xf32>
    %25 = arith.addf %22, %24 : vector<16x128xf32>
    %cst_20 = arith.constant 0.000000e+00 : f32
    %26 = vector.broadcast %cst_20 : f32 to vector<16x128xf32>
    %27 = arith.maximumf %25, %26 : vector<16x128xf32>
    %28 = arith.truncf %27 : vector<16x128xf32> to vector<16x128xbf16>
    %29 = vector.extract_strided_slice %28 {offsets = [0, 0], sizes = [16, 64], strides = [1, 1]} : vector<16x128xbf16> to vector<16x64xbf16>
    %30 = vector.extract_strided_slice %28 {offsets = [0, 64], sizes = [16, 64], strides = [1, 1]} : vector<16x128xbf16> to vector<16x64xbf16>
    %cst_21 = arith.constant 0.000000e+00 : bf16
    %31 = vector.broadcast %cst_21 : bf16 to vector<1x64xbf16>
    %c0_22 = arith.constant 0 : index
    %c64_23 = arith.constant 64 : index
    %32 = vector.load %arg9[%c0_22, %c64_23] : memref<16x256xbf16, #tpu.memory_space<vmem>>, vector<16x64xbf16>
    tpu.vector_store %arg9[%c0_22, %c64_23], %29 {strides = array<i32>} : memref<16x256xbf16, #tpu.memory_space<vmem>>, vector<16x64xbf16>,
    %c0_24 = arith.constant 0 : index
    %c128_25 = arith.constant 128 : index
    %33 = vector.load %arg9[%c0_24, %c128_25] : memref<16x256xbf16, #tpu.memory_space<vmem>>, vector<16x64xbf16>
    tpu.vector_store %arg9[%c0_24, %c128_25], %30 {strides = array<i32>} : memref<16x256xbf16, #tpu.memory_space<vmem>>, vector<16x64xbf16>,
    %34 = vector.extract_strided_slice %30 {offsets = [0, 0], sizes = [15, 64], strides = [1, 1]} : vector<16x64xbf16> to vector<15x64xbf16>
    %35 = tpu.concatenate %31, %34 in 0 : vector<1x64xbf16>, vector<15x64xbf16> -> vector<16x64xbf16>
    %c0_26 = arith.constant 0 : index
    %c0_27 = arith.constant 0 : index
    %36 = vector.load %arg9[%c0_26, %c0_27] : memref<16x256xbf16, #tpu.memory_space<vmem>>, vector<16x64xbf16>
    tpu.vector_store %arg9[%c0_26, %c0_27], %35 {strides = array<i32>} : memref<16x256xbf16, #tpu.memory_space<vmem>>, vector<16x64xbf16>,
    %37 = vector.extract_strided_slice %29 {offsets = [1, 0], sizes = [15, 64], strides = [1, 1]} : vector<16x64xbf16> to vector<15x64xbf16>
    %38 = tpu.concatenate %37, %31 in 0 : vector<15x64xbf16>, vector<1x64xbf16> -> vector<16x64xbf16>
    %c0_28 = arith.constant 0 : index
    %c192_29 = arith.constant 192 : index
    %39 = vector.load %arg9[%c0_28, %c192_29] : memref<16x256xbf16, #tpu.memory_space<vmem>>, vector<16x64xbf16>
    tpu.vector_store %arg9[%c0_28, %c192_29], %38 {strides = array<i32>} : memref<16x256xbf16, #tpu.memory_space<vmem>>, vector<16x64xbf16>,
    %c0_30 = arith.constant 0 : index
    %c0_31 = arith.constant 0 : index
    %40 = vector.load %arg9[%c0_30, %c0_31] : memref<16x256xbf16, #tpu.memory_space<vmem>>, vector<1x64xbf16>
    tpu.vector_store %arg9[%c0_30, %c0_31], %31 {strides = array<i32>} : memref<16x256xbf16, #tpu.memory_space<vmem>>, vector<1x64xbf16>,
    %c7_32 = arith.constant 7 : index
    %c192_33 = arith.constant 192 : index
    %41 = vector.load %arg9[%c7_32, %c192_33] : memref<16x256xbf16, #tpu.memory_space<vmem>>, vector<1x64xbf16>
    tpu.vector_store %arg9[%c7_32, %c192_33], %31 {strides = array<i32>} : memref<16x256xbf16, #tpu.memory_space<vmem>>, vector<1x64xbf16>,
    %c8_34 = arith.constant 8 : index
    %c0_35 = arith.constant 0 : index
    %42 = vector.load %arg9[%c8_34, %c0_35] : memref<16x256xbf16, #tpu.memory_space<vmem>>, vector<1x64xbf16>
    tpu.vector_store %arg9[%c8_34, %c0_35], %31 {strides = array<i32>} : memref<16x256xbf16, #tpu.memory_space<vmem>>, vector<1x64xbf16>,
    %c15_36 = arith.constant 15 : index
    %c192_37 = arith.constant 192 : index
    %43 = vector.load %arg9[%c15_36, %c192_37] : memref<16x256xbf16, #tpu.memory_space<vmem>>, vector<1x64xbf16>
    tpu.vector_store %arg9[%c15_36, %c192_37], %31 {strides = array<i32>} : memref<16x256xbf16, #tpu.memory_space<vmem>>, vector<1x64xbf16>,
    %c0_38 = arith.constant 0 : index
    %c0_39 = arith.constant 0 : index
    %44 = vector.load %arg9[%c0_38, %c0_39] : memref<16x256xbf16, #tpu.memory_space<vmem>>, vector<16x256xbf16>
    %c0_40 = arith.constant 0 : index
    %c0_41 = arith.constant 0 : index
    %45 = vector.load %arg5[%c0_40, %c0_41] : memref<256x128xbf16, #tpu.memory_space<vmem>>, vector<256x128xbf16>
    %cst_42 = arith.constant dense<0.000000e+00> : vector<16x128xf32>
    %46 = tpu.matmul %44, %45, %cst_42 {dimension_numbers = #tpu.dot_dimension_numbers<[1], [0], [0], [1], [0, 0, 1, 1], [], []>} : vector<16x256xbf16>, vector<256x128xbf16>, vector<16x128xf32> -> vector<16x128xf32>
    %c0_43 = arith.constant 0 : index
    %c0_44 = arith.constant 0 : index
    %47 = vector.load %arg6[%c0_43, %c0_44] : memref<1x128xf32, #tpu.memory_space<vmem>>, vector<1x128xf32>
    %48 = vector.broadcast %47 : vector<1x128xf32> to vector<16x128xf32>
    %49 = arith.mulf %46, %48 : vector<16x128xf32>
    %c0_45 = arith.constant 0 : index
    %c0_46 = arith.constant 0 : index
    %50 = vector.load %arg7[%c0_45, %c0_46] : memref<1x128xf32, #tpu.memory_space<vmem>>, vector<1x128xf32>
    %51 = vector.broadcast %50 : vector<1x128xf32> to vector<16x128xf32>
    %52 = arith.addf %49, %51 : vector<16x128xf32>
    %c0_47 = arith.constant 0 : index
    %c0_48 = arith.constant 0 : index
    %53 = vector.load %arg1[%c0_47, %c0_48] : memref<16x128xf32, #tpu.memory_space<vmem>>, vector<16x128xf32>
    %54 = arith.addf %52, %53 : vector<16x128xf32>
    %cst_49 = arith.constant 0.000000e+00 : f32
    %55 = vector.broadcast %cst_49 : f32 to vector<16x128xf32>
    %56 = arith.maximumf %54, %55 : vector<16x128xf32>
    %c0_50 = arith.constant 0 : index
    %c0_51 = arith.constant 0 : index
    %57 = vector.load %arg8[%c0_50, %c0_51] : memref<16x128xf32, #tpu.memory_space<vmem>>, vector<16x128xf32>
    tpu.vector_store %arg8[%c0_50, %c0_51], %56 {strides = array<i32>} : memref<16x128xf32, #tpu.memory_space<vmem>>, vector<16x128xf32>,
    return
  }
  func.func @transform_0(%arg0: i32) -> (i32, i32) {
    %c0_i32 = arith.constant 0 : i32
    %c0_i32_0 = arith.constant 0 : i32
    return %arg0, %c0_i32 : i32, i32
  }
  func.func @transform_1(%arg0: i32) -> (i32, i32) {
    %c0_i32 = arith.constant 0 : i32
    %c0_i32_0 = arith.constant 0 : i32
    %c0_i32_1 = arith.constant 0 : i32
    return %c0_i32, %c0_i32_0 : i32, i32
  }
  func.func @transform_2(%arg0: i32) -> (i32, i32) {
    %c0_i32 = arith.constant 0 : i32
    %c0_i32_0 = arith.constant 0 : i32
    %c0_i32_1 = arith.constant 0 : i32
    return %c0_i32, %c0_i32_0 : i32, i32
  }
  func.func @transform_3(%arg0: i32) -> (i32, i32) {
    %c0_i32 = arith.constant 0 : i32
    %c0_i32_0 = arith.constant 0 : i32
    %c0_i32_1 = arith.constant 0 : i32
    return %c0_i32, %c0_i32_0 : i32, i32
  }
  func.func @transform_4(%arg0: i32) -> (i32, i32) {
    %c0_i32 = arith.constant 0 : i32
    %c0_i32_0 = arith.constant 0 : i32
    %c0_i32_1 = arith.constant 0 : i32
    return %c0_i32, %c0_i32_0 : i32, i32
  }
  func.func @transform_5(%arg0: i32) -> (i32, i32) {
    %c0_i32 = arith.constant 0 : i32
    %c0_i32_0 = arith.constant 0 : i32
    %c0_i32_1 = arith.constant 0 : i32
    return %c0_i32, %c0_i32_0 : i32, i32
  }
  func.func @transform_6(%arg0: i32) -> (i32, i32) {
    %c0_i32 = arith.constant 0 : i32
    %c0_i32_0 = arith.constant 0 : i32
    %c0_i32_1 = arith.constant 0 : i32
    return %c0_i32, %c0_i32_0 : i32, i32
  }
  func.func @transform_7(%arg0: i32) -> (i32, i32) {
    %c0_i32 = arith.constant 0 : i32
    %c0_i32_0 = arith.constant 0 : i32
    return %arg0, %c0_i32 : i32, i32
  }
}

</mosaic_0001>

<bundles_post_ra>
// kernel: tile.23
= control target key start
LH: loop header
LB: loop body
LE: loop exit
PB: predicated region body
PF: predicated region fallthrough
CT: control target
= control target key end

     0   :  { %s40_s0 = inlined_call_operand.vmem [shape: f32[4], index: 0, kind: input, shape index: {}]   ;;  %s41_s1 = inlined_call_operand.vmem [shape: f32[32,4], index: 1, kind: output, shape index: {}]  }
   0x1   :  { %v4_v0 = vld [vmem:[%s40_s0] ss:$0 sm:$0xff] }
   0x2   :  { %5 = vst [vmem:[%s41_s1] sm:$0xff] %v4_v0  ;;  %12 = vst [vmem:[%s41_s1 + $0x8] sm:$0xff] %v4_v0 }
   0x3   :  { %13 = vst [vmem:[%s41_s1 + $0x10] sm:$0xff] %v4_v0  ;;  %14 = vst [vmem:[%s41_s1 + $0x18] sm:$0xff] %v4_v0 }

// kernel: tile.24
= control target key start
LH: loop header
LB: loop body
LE: loop exit
PB: predicated region body
PF: predicated region fallthrough
CT: control target
= control target key end

     0   :  { %s259_s10 = smov 124   ;;  %s260_s11 = smov 116   ;;  %vm3_vm0 = vcmask 31744   ;;  %vm9_vm1 = vcmask 1048544   ;;  %vm15_vm2 = vcmask 1015744   ;;  %vm21_vm3 = vcmask 982944   ;;  %s399_s0 = inlined_call_operand.vmem [shape: f32[32,4], index: 0, kind: input, shape index: {}]   ;;  %s400_s1 = inlined_call_operand.vmem [shape: f32[1,128], index: 1, kind: output, shape index: {}]  }
   0x1   :  { %v197_v0 = vld [vmem:[%s399_s0 + $0x1f] sm:$0x1]   ;;  %v199_v1 = vld [vmem:[%s399_s0 + $0x1d] sm:$0x1]   ;;  %v198_v2 = vld [vmem:[%s399_s0 + $0x1e] sm:$0x1]  }
   0x2   :  { %7 = vrot.lane.b32.xlu0 %v197_v0, %s259_s10  ;;  %19 = vrot.lane.b32.xlu1 %v199_v1, %s260_s11  ;;  %v200_v3 = vld [vmem:[%s399_s0 + $0x1c] sm:$0x1]   ;;  %s261_s16 = smov 120   ;;  %s262_s17 = smov 112   ;;  %v201_v4 = vld [vmem:[%s399_s0 + $0x1b] sm:$0x1]  }
   0x3   :  { %v202_v5 = vld [vmem:[%s399_s0 + $0x1a] sm:$0x1]   ;;  %s263_s22 = smov 108   ;;  %s264_s23 = smov 104   ;;  %v203_v6 = vld [vmem:[%s399_s0 + $0x19] sm:$0x1]  }
   0x4   :  { %v204_v7 = vld [vmem:[%s399_s0 + $0x18] sm:$0x1]   ;;  %s265_s28 = smov 100   ;;  %s266_s29 = smov 96   ;;  %v205_v8 = vld [vmem:[%s399_s0 + $0x17] sm:$0x1]  }
   0x5   :  { %v206_v9 = vld [vmem:[%s399_s0 + $0x16] sm:$0x1]   ;;  %v2_v10 = vld [vmem:[%s399_s0] sm:$0x1]   ;;  %s267_s7 = smov 92   ;;  %s268_s8 = smov 88  }
   0x6   :  { %13 = vrot.lane.b32.xlu0 %v198_v2, %s261_s16  ;;  %25 = vrot.lane.b32.xlu1 %v200_v3, %s262_s17  ;;  %4 = vst.msk [vmem:[#allocation0] sm:$0x1] %vm3_vm0, %v2_v10   ;;  %v207_v11 = vld [vmem:[%s399_s0 + $0x15] sm:$0x1]   ;;  %v208_v12 = vld [vmem:[%s399_s0 + $0x14] sm:$0x1]  }
   0x7   :  { %s269_s13 = smov 84   ;;  %s270_s14 = smov 80   ;;  %v209_v13 = vld [vmem:[%s399_s0 + $0x13] sm:$0x1]   ;;  %v210_v14 = vld [vmem:[%s399_s0 + $0x12] sm:$0x1]  }
   0x8   :  { %s271_s19 = smov 76   ;;  %s272_s20 = smov 72   ;;  %v211_v15 = vld [vmem:[%s399_s0 + $0x11] sm:$0x1]   ;;  %v212_v16 = vld [vmem:[%s399_s0 + $0x10] sm:$0x1]  }
   0x9   :  { %s273_s25 = smov 68   ;;  %s274_s26 = smov 64   ;;  %v213_v17 = vld [vmem:[%s399_s0 + $0xf] sm:$0x1]   ;;  %v214_v18 = vld [vmem:[%s399_s0 + $0xe] sm:$0x1]  }
   0xa   :  { %31 = vrot.lane.b32.xlu0 %v201_v4, %s263_s22  ;;  %37 = vrot.lane.b32.xlu1 %v202_v5, %s264_s23  ;;  %s275_s2 = smov 60   ;;  %s276_s3 = smov 56   ;;  %v215_v19 = vld [vmem:[%s399_s0 + $0xd] sm:$0x1]   ;;  %v216_v20 = vld [vmem:[%s399_s0 + $0xc] sm:$0x1]  }
   0xb   :  { %s278_s9 = smov 48   ;;  %v217_v21 = vld [vmem:[%s399_s0 + $0xb] sm:$0x1]   ;;  %v218_v22 = vld [vmem:[%s399_s0 + $0xa] sm:$0x1]   ;;  %s280_s15 = smov 40  }
   0xc   :  { %v219_v23 = vld [vmem:[%s399_s0 + $0x9] sm:$0x1]   ;;  %v220_v24 = vld [vmem:[%s399_s0 + $0x8] sm:$0x1]   ;;  %s282_s21 = smov 32   ;;  %s284_s27 = smov 24  }
   0xd   :  { %v221_v25 = vld [vmem:[%s399_s0 + $0x7] sm:$0x1]   ;;  %v222_v26 = vld [vmem:[%s399_s0 + $0x6] sm:$0x1]   ;;  %v223_v27 = vld [vmem:[%s399_s0 + $0x5] sm:$0x1]  }
   0xe   :  { %43 = vrot.lane.b32.xlu0 %v203_v6, %s265_s28  ;;  %49 = vrot.lane.b32.xlu1 %v204_v7, %s266_s29  ;;  %v224_v28 = vld [vmem:[%s399_s0 + $0x4] sm:$0x1]   ;;  %s286_s4 = smov 16   ;;  %v225_v29 = vld [vmem:[%s399_s0 + $0x3] sm:$0x1]   ;;  %s288_s10 = smov 8  }
   0xf   :  { %v226_v30 = vld [vmem:[%s399_s0 + $0x2] sm:$0x1]   ;;  %v227_v31 = vld [vmem:[%s399_s0 + $0x1] sm:$0x1]   ;;  %s289_s0 = smov 4   ;;  %vm27_vm4 = vcmask 950144  }
  0x10   :  { %vm33_vm5 = vcmask 917344   ;;  %vm39_vm6 = vcmask 884544   ;;  %vm45_vm7 = vcmask 851744   ;;  %vm51_vm8 = vcmask 818944  }
  0x11   :  { %vm57_vm9 = vcmask 786144   ;;  %vm63_vm10 = vcmask 753344   ;;  %vm69_vm11 = vcmask 720544   ;;  %vm75_vm12 = vcmask 687744  }
  0x12   :  { %55 = vrot.lane.b32.xlu0 %v205_v8, %s267_s7  ;;  %61 = vrot.lane.b32.xlu1 %v206_v9, %s268_s8  ;;  %s277_s8 = smov 52   ;;  %vm81_vm13 = vcmask 654944   ;;  %vm87_vm14 = vcmask 622144   ;;  %vm93_vm15 = vcmask 589344   ;;  %vm99_vm0 = vcmask 556544  }
  0x16   :  { %67 = vrot.lane.b32.xlu0 %v207_v11, %s269_s13  ;;  %73 = vrot.lane.b32.xlu1 %v208_v12, %s270_s14  ;;  %s279_s14 = smov 44  }
  0x1a   :  { %79 = vrot.lane.b32.xlu0 %v209_v13, %s271_s19  ;;  %85 = vrot.lane.b32.xlu1 %v210_v14, %s272_s20  ;;  %s281_s20 = smov 36  }
  0x1e   :  { %91 = vrot.lane.b32.xlu0 %v211_v15, %s273_s25  ;;  %97 = vrot.lane.b32.xlu1 %v212_v16, %s274_s26  ;;  %s283_s26 = smov 28  }
  0x22   :  { %103 = vrot.lane.b32.xlu0 %v213_v17, %s275_s2  ;;  %109 = vrot.lane.b32.xlu1 %v214_v18, %s276_s3  ;;  %s285_s3 = smov 20  }
  0x26   :  { %115 = vrot.lane.b32.xlu0 %v215_v19, %s277_s8  ;;  %121 = vrot.lane.b32.xlu1 %v216_v20, %s278_s9  ;;  %s287_s9 = smov 12  }
  0x2a   :  { %127 = vrot.lane.b32.xlu0 %v217_v21, %s279_s14  ;;  %133 = vrot.lane.b32.xlu1 %v218_v22, %s280_s15 }
  0x2e   :  { %139 = vrot.lane.b32.xlu0 %v219_v23, %s281_s20  ;;  %145 = vrot.lane.b32.xlu1 %v220_v24, %s282_s21 }
  0x32   :  { %151 = vrot.lane.b32.xlu0 %v221_v25, %s283_s26  ;;  %157 = vrot.lane.b32.xlu1 %v222_v26, %s284_s27 }
  0x36   :  { %163 = vrot.lane.b32.xlu0 %v223_v27, %s285_s3  ;;  %169 = vrot.lane.b32.xlu1 %v224_v28, %s286_s4 }
  0x3a   :  { %175 = vrot.lane.b32.xlu0 %v225_v29, %s287_s9  ;;  %181 = vrot.lane.b32.xlu1 %v226_v30, %s288_s10 }
  0x3e   :  { %187 = vrot.lane.b32.xlu0 %v227_v31, %s289_s0 }
  0x74   :  { %v8_v32 = vpop.permute.xlu0 %7   ;;  %v20_v33 = vpop.permute.xlu1 %19  }
  0x75   :  { %10 = vst.msk [vmem:[#allocation0] sm:$0x1] %vm9_vm1, %v8_v32   ;;  %vm105_vm1 = vcmask 523744  }
  0x78   :  { %v14_v34 = vpop.permute.xlu0 %13   ;;  %v26_v35 = vpop.permute.xlu1 %25  }
  0x79   :  { %16 = vst.msk [vmem:[#allocation0] sm:$0x1] %vm15_vm2, %v14_v34   ;;  %vm111_vm2 = vcmask 490944  }
  0x7a   :  { %22 = vst.msk [vmem:[#allocation0] sm:$0x1] %vm21_vm3, %v20_v33   ;;  %vm117_vm3 = vcmask 458144  }
  0x7b   :  { %28 = vst.msk [vmem:[#allocation0] sm:$0x1] %vm27_vm4, %v26_v35   ;;  %vm123_vm4 = vcmask 425344  }
  0x7c   :  { %v32_v36 = vpop.permute.xlu0 %31   ;;  %v38_v37 = vpop.permute.xlu1 %37  }
  0x7d   :  { %34 = vst.msk [vmem:[#allocation0] sm:$0x1] %vm33_vm5, %v32_v36   ;;  %vm129_vm5 = vcmask 392544  }
  0x7e   :  { %40 = vst.msk [vmem:[#allocation0] sm:$0x1] %vm39_vm6, %v38_v37   ;;  %vm135_vm6 = vcmask 359744  }
  0x80   :  { %v44_v38 = vpop.permute.xlu0 %43   ;;  %v50_v39 = vpop.permute.xlu1 %49  }
  0x81   :  { %46 = vst.msk [vmem:[#allocation0] sm:$0x1] %vm45_vm7, %v44_v38   ;;  %vm141_vm7 = vcmask 326944  }
  0x82   :  { %52 = vst.msk [vmem:[#allocation0] sm:$0x1] %vm51_vm8, %v50_v39   ;;  %vm147_vm8 = vcmask 294144  }
  0x84   :  { %v56_v40 = vpop.permute.xlu0 %55   ;;  %v62_v41 = vpop.permute.xlu1 %61  }
  0x85   :  { %58 = vst.msk [vmem:[#allocation0] sm:$0x1] %vm57_vm9, %v56_v40   ;;  %vm153_vm9 = vcmask 261344  }
  0x86   :  { %64 = vst.msk [vmem:[#allocation0] sm:$0x1] %vm63_vm10, %v62_v41   ;;  %vm159_vm10 = vcmask 228544  }
  0x88   :  { %v68_v42 = vpop.permute.xlu0 %67   ;;  %v74_v43 = vpop.permute.xlu1 %73  }
  0x89   :  { %70 = vst.msk [vmem:[#allocation0] sm:$0x1] %vm69_vm11, %v68_v42   ;;  %vm165_vm11 = vcmask 195744  }
  0x8a   :  { %76 = vst.msk [vmem:[#allocation0] sm:$0x1] %vm75_vm12, %v74_v43   ;;  %vm171_vm12 = vcmask 162944  }
  0x8c   :  { %v80_v44 = vpop.permute.xlu0 %79   ;;  %v86_v45 = vpop.permute.xlu1 %85  }
  0x8d   :  { %82 = vst.msk [vmem:[#allocation0] sm:$0x1] %vm81_vm13, %v80_v44   ;;  %vm177_vm13 = vcmask 130144  }
  0x8e   :  { %88 = vst.msk [vmem:[#allocation0] sm:$0x1] %vm87_vm14, %v86_v45   ;;  %vm183_vm14 = vcmask 97344  }
  0x90   :  { %v92_v46 = vpop.permute.xlu0 %91   ;;  %v98_v47 = vpop.permute.xlu1 %97  }
  0x91   :  { %94 = vst.msk [vmem:[#allocation0] sm:$0x1] %vm93_vm15, %v92_v46   ;;  %vm189_vm15 = vcmask 64544  }
  0x92   :  { %100 = vst.msk [vmem:[#allocation0] sm:$0x1] %vm99_vm0, %v98_v47  }
  0x94   :  { %v104_v48 = vpop.permute.xlu0 %103   ;;  %v110_v49 = vpop.permute.xlu1 %109  }
  0x95   :  { %106 = vst.msk [vmem:[#allocation0] sm:$0x1] %vm105_vm1, %v104_v48  }
  0x96   :  { %112 = vst.msk [vmem:[#allocation0] sm:$0x1] %vm111_vm2, %v110_v49  }
  0x98   :  { %v116_v50 = vpop.permute.xlu0 %115   ;;  %v122_v51 = vpop.permute.xlu1 %121  }
  0x99   :  { %118 = vst.msk [vmem:[#allocation0] sm:$0x1] %vm117_vm3, %v116_v50  }
  0x9a   :  { %124 = vst.msk [vmem:[#allocation0] sm:$0x1] %vm123_vm4, %v122_v51  }
  0x9c   :  { %v128_v52 = vpop.permute.xlu0 %127   ;;  %v134_v53 = vpop.permute.xlu1 %133  }
  0x9d   :  { %130 = vst.msk [vmem:[#allocation0] sm:$0x1] %vm129_vm5, %v128_v52  }
  0x9e   :  { %136 = vst.msk [vmem:[#allocation0] sm:$0x1] %vm135_vm6, %v134_v53  }
  0xa0   :  { %v140_v54 = vpop.permute.xlu0 %139   ;;  %v146_v55 = vpop.permute.xlu1 %145  }
  0xa1   :  { %142 = vst.msk [vmem:[#allocation0] sm:$0x1] %vm141_vm7, %v140_v54  }
  0xa2   :  { %148 = vst.msk [vmem:[#allocation0] sm:$0x1] %vm147_vm8, %v146_v55  }
  0xa4   :  { %v152_v56 = vpop.permute.xlu0 %151   ;;  %v158_v57 = vpop.permute.xlu1 %157  }
  0xa5   :  { %154 = vst.msk [vmem:[#allocation0] sm:$0x1] %vm153_vm9, %v152_v56  }
  0xa6   :  { %160 = vst.msk [vmem:[#allocation0] sm:$0x1] %vm159_vm10, %v158_v57  }
  0xa8   :  { %v164_v58 = vpop.permute.xlu0 %163   ;;  %v170_v59 = vpop.permute.xlu1 %169  }
  0xa9   :  { %166 = vst.msk [vmem:[#allocation0] sm:$0x1] %vm165_vm11, %v164_v58  }
  0xaa   :  { %172 = vst.msk [vmem:[#allocation0] sm:$0x1] %vm171_vm12, %v170_v59  }
  0xac   :  { %v176_v60 = vpop.permute.xlu0 %175   ;;  %v182_v61 = vpop.permute.xlu1 %181  }
  0xad   :  { %178 = vst.msk [vmem:[#allocation0] sm:$0x1] %vm177_vm13, %v176_v60  }
  0xae   :  { %184 = vst.msk [vmem:[#allocation0] sm:$0x1] %vm183_vm14, %v182_v61  }
  0xb0   :  { %v188_v62 = vpop.permute.xlu0 %187  }
  0xb1   :  { %190 = vst.msk [vmem:[#allocation0] sm:$0x1] %vm189_vm15, %v188_v62  }
  0xb8   :  { %v194_v63 = vld [vmem:[#allocation0] sm:$0x1] }
  0xb9   :  { %196 = vst [vmem:[%s400_s1] sm:$0x1] %v194_v63 }

// kernel: basic_block_forward.1
= control target key start
LH: loop header
LB: loop body
LE: loop exit
PB: predicated region body
PF: predicated region fallthrough
CT: control target
= control target key end

     0   :  { %vm56_vm0 = vcmask 1047552   ;;  %vm57_vm1 = vsmask.f32 7424  ;;  %s633_s9 = smov 64   ;;  %vm34_vm3 = vcmask 1048064   ;;  %vm36_vm4 = vcmask 523264   ;;  %s864_s0 = inlined_call_operand.vmem [shape: f32[16,128], index: 0, kind: input, shape index: {}]   ;;  %s865_s1 = inlined_call_operand.vmem [shape: bf16[256,128], index: 1, kind: input, shape index: {}]   ;;  %s866_s4 = inlined_call_operand.vmem [shape: bf16[256,128], index: 4, kind: input, shape index: {}]   ;;  %s867_s2 = inlined_call_operand.vmem [shape: f32[1,128], index: 2, kind: input, shape index: {}]   ;;  %s868_s3 = inlined_call_operand.vmem [shape: f32[1,128], index: 3, kind: input, shape index: {}]   ;;  %s869_s5 = inlined_call_operand.vmem [shape: f32[1,128], index: 5, kind: input, shape index: {}]   ;;  %s870_s6 = inlined_call_operand.vmem [shape: f32[1,128], index: 6, kind: input, shape index: {}]   ;;  %s871_s7 = inlined_call_operand.vmem [shape: f32[16,128], index: 7, kind: output, shape index: {}]  }
   0x1   :  { %v677_v0 = vld [vmem:[%s864_s0] sm:$0xff]  ;;  %v682_v1 = vld [vmem:[%s864_s0 + $0x8] sm:$0xff]  ;;  %vm693_vm2 = vmand %vm56_vm0, %vm57_vm1  ;;  %vm48_vm5 = vcmask 1040384   ;;  %vm49_vm6 = vsmask.f32 256  ;;  %vm65_vm8 = vcmask 516096  }
   0x2   :  { %v29_v2 = vpack.c.bf16 %v682_v1, %v677_v0  ;;  %v601_v3 = vld [vmem:[%s865_s1 + $0x40] sm:$0xff]   ;;  %v603_v8 = vld [vmem:[%s865_s1 + $0x48] sm:$0xff]   ;;  %v605_v12 = vld [vmem:[%s865_s1 + $0x50] sm:$0xff]   ;;  %vm76_vm9 = vcmask 520196   ;;  %vm77_vm10 = vsmask.f32 4352 }
   0x3   :  { %v602_v4 = vld [vmem:[%s865_s1] sm:$0xff]   ;;  %556 = vmatprep.subr.bf16.mxu0 %v601_v3  ;;  %v604_v11 = vld [vmem:[%s865_s1 + $0x8] sm:$0xff]   ;;  %v606_v15 = vld [vmem:[%s865_s1 + $0x10] sm:$0xff]   ;;  %vm70_vm11 = vcmask 1043971   ;;  %vm71_vm12 = vsmask.f32 7950 }
   0x4   :  { %31 = vrot.lane.b32.xlu0 %v29_v2, %s633_s9  ;;  %v39_v5 = vshrl.u32 %v29_v2, 16  ;;  %v42_v6 = vshll.u32 %v29_v2, 16  ;;  %557 = vmatpush3.bf16.msra.mxu0 %v602_v4  ;;  %v607_v17 = vld [vmem:[%s865_s1 + $0x58] sm:$0xff]   ;;  %v609_v19 = vld [vmem:[%s865_s1 + $0x60] sm:$0xff]   ;;  %v611_v21 = vld [vmem:[%s865_s1 + $0x68] sm:$0xff]   ;;  %vm82_vm14 = vcmask 1048071  }
   0x5   :  { %558 = vmatprep.subr.bf16.mxu0 %v603_v8  ;;  %v608_v18 = vld [vmem:[%s865_s1 + $0x18] sm:$0xff]   ;;  %v610_v20 = vld [vmem:[%s865_s1 + $0x20] sm:$0xff]   ;;  %v612_v22 = vld [vmem:[%s865_s1 + $0x28] sm:$0xff]   ;;  %vm83_vm15 = vsmask.f32 7966 }
   0x6   :  { %v41_v9 = vrot.slane %v39_v5, 7  ;;  %v53_v10 = vrot.slane %v42_v6, 1  ;;  %v613_v23 = vld [vmem:[%s865_s1 + $0x70] sm:$0xff]   ;;  %v615_v25 = vld [vmem:[%s865_s1 + $0x78] sm:$0xff]   ;;  %vm745_vm7 = vmand %vm48_vm5, %vm49_vm6 }
   0x7   :  { %v614_v24 = vld [vmem:[%s865_s1 + $0x30] sm:$0xff]   ;;  %v616_v26 = vld [vmem:[%s865_s1 + $0x38] sm:$0xff]   ;;  %vm753_vm13 = vmand %vm65_vm8, %vm49_vm6 }
   0x8   :  { %v44_v13 = vor.u32 %v42_v6, %v41_v9  ;;  %v54_v14 = vor.u32 %v53_v10, %v39_v5  ;;  %559 = vmatpush3.bf16.msra.mxu0 %v604_v11  ;;  %vm757_vm0 = vmand %vm76_vm9, %vm77_vm10  ;;  %v617_v46 = vld [vmem:[%s866_s4 + $0x40] sm:$0xff]   ;;  %v619_v48 = vld [vmem:[%s866_s4 + $0x48] sm:$0xff]  }
   0x9   :  { %560 = vmatprep.subr.bf16.mxu0 %v605_v12  ;;  %vm761_vm1 = vmand %vm70_vm11, %vm71_vm12  ;;  %v618_v47 = vld [vmem:[%s866_s4] sm:$0xff]   ;;  %578 = vmatprep.subr.bf16.mxu1 %v617_v46  ;;  %v620_v49 = vld [vmem:[%s866_s4 + $0x8] sm:$0xff]  }
   0xa   :  { %45 = vrot.lane.b32.xlu0 %v44_v13, %s633_s9  ;;  %v59_v16 = vsel %vm693_vm2, %v54_v14, 0  ;;  %vm765_vm5 = vmand %vm82_vm14, %vm83_vm15  ;;  %579 = vmatpush3.bf16.msra.mxu1 %v618_v47  ;;  %v621_v51 = vld [vmem:[%s866_s4 + $0x50] sm:$0xff]   ;;  %v536_v53 = vld [vmem:[%s867_s2] ss:$0 sm:$0xff] }
   0xb   :  { %61 = vrot.lane.b32.xlu1 %v59_v16, %s633_s9  ;;  %580 = vmatprep.subr.bf16.mxu1 %v619_v48  ;;  %v622_v54 = vld [vmem:[%s866_s4 + $0x10] sm:$0xff]   ;;  %v623_v55 = vld [vmem:[%s866_s4 + $0x58] sm:$0xff]   ;;  %v537_v58 = vld [vmem:[%s868_s3] ss:$0 sm:$0xff] }
   0xc   :  { %561 = vmatpush3.bf16.msra.mxu0 %v606_v15  ;;  %v624_v62 = vld [vmem:[%s866_s4 + $0x18] sm:$0xff]   ;;  %v625_v4 = vld [vmem:[%s866_s4 + $0x60] sm:$0xff]   ;;  %v627_v10 = vld [vmem:[%s866_s4 + $0x68] sm:$0xff]  }
   0xd   :  { %562 = vmatprep.subr.bf16.mxu0 %v607_v17  ;;  %v626_v8 = vld [vmem:[%s866_s4 + $0x20] sm:$0xff]   ;;  %v628_v13 = vld [vmem:[%s866_s4 + $0x28] sm:$0xff]   ;;  %v629_v16 = vld [vmem:[%s866_s4 + $0x70] sm:$0xff]  }
   0xe   :  { %581 = vmatpush3.bf16.msra.mxu1 %v620_v49  ;;  %v554_v33 = vld [vmem:[%s869_s5] ss:$0 sm:$0xff] }
   0xf   :  { %582 = vmatprep.subr.bf16.mxu1 %v621_v51 }
  0x10   :  { %563 = vmatpush3.bf16.msra.mxu0 %v608_v18 }
  0x11   :  { %564 = vmatprep.subr.bf16.mxu0 %v609_v19  ;;  %v630_v19 = vld [vmem:[%s866_s4 + $0x30] sm:$0xff]  }
  0x12   :  { %583 = vmatpush3.bf16.msra.mxu1 %v622_v54 }
  0x13   :  { %584 = vmatprep.subr.bf16.mxu1 %v623_v55 }
  0x14   :  { %565 = vmatpush3.bf16.msra.mxu0 %v610_v20  ;;  %v631_v20 = vld [vmem:[%s866_s4 + $0x78] sm:$0xff]  }
  0x15   :  { %566 = vmatprep.subr.bf16.mxu0 %v611_v21 }
  0x16   :  { %585 = vmatpush3.bf16.msra.mxu1 %v624_v62 }
  0x17   :  { %586 = vmatprep.subr.bf16.mxu1 %v625_v4 }
  0x18   :  { %567 = vmatpush3.bf16.msra.mxu0 %v612_v22  ;;  %v632_v22 = vld [vmem:[%s866_s4 + $0x38] sm:$0xff]  }
  0x19   :  { %568 = vmatprep.subr.bf16.mxu0 %v613_v23 }
  0x1a   :  { %587 = vmatpush3.bf16.msra.mxu1 %v626_v8 }
  0x1b   :  { %588 = vmatprep.subr.bf16.mxu1 %v627_v10 }
  0x1c   :  { %569 = vmatpush3.bf16.msra.mxu0 %v614_v24 }
  0x1d   :  { %570 = vmatprep.subr.bf16.mxu0 %v615_v25 }
  0x1e   :  { %589 = vmatpush3.bf16.msra.mxu1 %v628_v13 }
  0x1f   :  { %590 = vmatprep.subr.bf16.mxu1 %v629_v16 }
  0x20   :  { %571 = vmatpush3.bf16.msra.mxu0 %v616_v26 }
  0x22   :  { %591 = vmatpush3.bf16.msra.mxu1 %v630_v19 }
  0x23   :  { %592 = vmatprep.subr.bf16.mxu1 %v631_v20 }
  0x26   :  { %593 = vmatpush3.bf16.msra.mxu1 %v632_v22 }
  0x76   :  { %v32_v27 = vpop.permute.xlu0 %31 }
  0x77   :  { %35 = vst.msk [vmem:[#allocation2] sm:$0xff] %vm34_vm3, %v32_v27 }
  0x78   :  { %37 = vst.msk [vmem:[#allocation2 + $0x8] sm:$0xff] %vm36_vm4, %v32_v27 }
  0x7c   :  { %v46_v29 = vpop.permute.xlu0 %45 }
  0x7d   :  { %v51_v30 = vsel %vm745_vm7, 0, %v46_v29  ;;  %v62_v31 = vpop.permute.xlu1 %61 }
  0x7e   :  { %52 = vst.msk [vmem:[#allocation2] sm:$0xff] %vm36_vm4, %v51_v30 }
  0x7f   :  { %64 = vst.msk [vmem:[#allocation2 + $0x8] sm:$0xff] %vm34_vm3, %v62_v31 }
  0x85   :  { %v67_v36 = vld [vmem:[#allocation2] sm:$0x1]  ;;  %v79_v37 = vld [vmem:[#allocation2] sm:$0x10] }
  0x86   :  { %v73_v38 = vld [vmem:[#allocation2 + $0x8] sm:$0x8]  ;;  %v68_v39 = vsel %vm753_vm13, 0, %v67_v36  ;;  %v80_v40 = vsel %vm757_vm0, 0, %v79_v37  ;;  %v85_v42 = vld [vmem:[#allocation2 + $0x8] sm:$0x80] }
  0x87   :  { %v74_v41 = vsel %vm761_vm1, 0, %v73_v38  ;;  %69 = vst [vmem:[#allocation2] sm:$0x1] %v68_v39  ;;  %81 = vst [vmem:[#allocation2] sm:$0x10] %v80_v40  ;;  %v86_v43 = vsel %vm765_vm5, 0, %v85_v42 }
  0x88   :  { %75 = vst [vmem:[#allocation2 + $0x8] sm:$0x8] %v74_v41  ;;  %87 = vst [vmem:[#allocation2 + $0x8] sm:$0x80] %v86_v43  ;;  %v555_v42 = vld [vmem:[%s870_s6] ss:$0 sm:$0xff] }
  0x8e   :  { %v88_v44 = vld [vmem:[#allocation2] sm:$0xff] }
  0x8f   :  { %v89_v45 = vld [vmem:[#allocation2 + $0x8] sm:$0xff] }
  0x90   :  { %250 = vmatprep.mubr.bf16.mxu0 %v89_v45 }
  0x91   :  { %251 = vmatmul.mubr.bf16.vlgmr.msra.gmra.mrb[0].mxu0 %v88_v44 }
 0x164   :  { %v572_v50 = vpop.f32.mrb[0].mxu0 }
 0x165   :  { %v573_v52 = vpop.f32.mrb[1].mxu0 }
 0x166   :  { %v574_v56 = vadd.f32 %v573_v52, %v572_v50  ;;  %v575_v57 = vpop.f32.mrb[2].mxu0 }
 0x167   :  { %v576_v59 = vpop.f32.mrb[3].mxu0 }
 0x168   :  { %v266_v60 = vmul.f32 %v574_v56, %v536_v53  ;;  %v577_v61 = vadd.f32 %v576_v59, %v575_v57 }
 0x16a   :  { %v275_v63 = vadd.f32 %v537_v58, %v266_v60  ;;  %v267_v2 = vmul.f32 %v577_v61, %v536_v53 }
 0x16c   :  { %v276_v3 = vadd.f32 %v537_v58, %v267_v2  ;;  %v277_v5 = vmax.f32 %v275_v63, 0.0 }
 0x16e   :  { %v278_v6 = vmax.f32 %v276_v3, 0.0 }
 0x170   :  { %v279_v9 = vpack.c.bf16 %v278_v6, %v277_v5 }
 0x172   :  { %281 = vrot.lane.b32.xlu1 %v279_v9, %s633_s9  ;;  %v287_v11 = vshrl.u32 %v279_v9, 16  ;;  %v290_v12 = vshll.u32 %v279_v9, 16 }
 0x174   :  { %v289_v14 = vrot.slane %v287_v11, 7  ;;  %v298_v15 = vrot.slane %v290_v12, 1 }
 0x176   :  { %v292_v17 = vor.u32 %v290_v12, %v289_v14  ;;  %v299_v18 = vor.u32 %v298_v15, %v287_v11 }
 0x178   :  { %293 = vrot.lane.b32.xlu0 %v292_v17, %s633_s9  ;;  %v301_v21 = vsel %vm693_vm2, %v299_v18, 0 }
 0x179   :  { %303 = vrot.lane.b32.xlu1 %v301_v21, %s633_s9 }
 0x1e4   :  { %v282_v23 = vpop.permute.xlu1 %281 }
 0x1e5   :  { %284 = vst.msk [vmem:[#allocation2] sm:$0xff] %vm34_vm3, %v282_v23 }
 0x1e6   :  { %285 = vst.msk [vmem:[#allocation2 + $0x8] sm:$0xff] %vm36_vm4, %v282_v23 }
 0x1ea   :  { %v294_v24 = vpop.permute.xlu0 %293 }
 0x1eb   :  { %v296_v25 = vsel %vm745_vm7, 0, %v294_v24  ;;  %v304_v7 = vpop.permute.xlu1 %303 }
 0x1ec   :  { %297 = vst.msk [vmem:[#allocation2] sm:$0xff] %vm36_vm4, %v296_v25 }
 0x1ed   :  { %306 = vst.msk [vmem:[#allocation2 + $0x8] sm:$0xff] %vm34_vm3, %v304_v7 }
 0x1f3   :  { %v307_v26 = vld [vmem:[#allocation2] sm:$0x1]  ;;  %v313_v27 = vld [vmem:[#allocation2] sm:$0x10] }
 0x1f4   :  { %v310_v29 = vld [vmem:[#allocation2 + $0x8] sm:$0x8]  ;;  %v308_v30 = vsel %vm753_vm13, 0, %v307_v26  ;;  %v314_v31 = vsel %vm757_vm0, 0, %v313_v27  ;;  %v316_v37 = vld [vmem:[#allocation2 + $0x8] sm:$0x80] }
 0x1f5   :  { %v311_v36 = vsel %vm761_vm1, 0, %v310_v29  ;;  %309 = vst [vmem:[#allocation2] sm:$0x1] %v308_v30  ;;  %315 = vst [vmem:[#allocation2] sm:$0x10] %v314_v31  ;;  %v317_v28 = vsel %vm765_vm5, 0, %v316_v37 }
 0x1f6   :  { %312 = vst [vmem:[#allocation2 + $0x8] sm:$0x8] %v311_v36  ;;  %318 = vst [vmem:[#allocation2 + $0x8] sm:$0x80] %v317_v28 }
 0x1fc   :  { %v319_v38 = vld [vmem:[#allocation2] sm:$0xff] }
 0x1fd   :  { %v320_v39 = vld [vmem:[#allocation2 + $0x8] sm:$0xff] }
 0x1fe   :  { %481 = vmatprep.mubr.bf16.mxu1 %v320_v39 }
 0x1ff   :  { %482 = vmatmul.mubr.bf16.vlgmr.msra.gmra.mrb[0].mxu1 %v319_v38 }
 0x2d2   :  { %v594_v32 = vpop.f32.mrb[0].mxu1 }
 0x2d3   :  { %v595_v40 = vpop.f32.mrb[1].mxu1 }
 0x2d4   :  { %v596_v34 = vadd.f32 %v595_v40, %v594_v32  ;;  %v597_v41 = vpop.f32.mrb[2].mxu1 }
 0x2d5   :  { %v598_v43 = vpop.f32.mrb[3].mxu1 }
 0x2d6   :  { %v497_v35 = vmul.f32 %v596_v34, %v554_v33  ;;  %v599_v44 = vadd.f32 %v598_v43, %v597_v41 }
 0x2d8   :  { %v506_v45 = vadd.f32 %v555_v42, %v497_v35  ;;  %v498_v46 = vmul.f32 %v599_v44, %v554_v33 }
 0x2da   :  { %v510_v47 = vadd.f32 %v506_v45, %v677_v0  ;;  %v507_v48 = vadd.f32 %v555_v42, %v498_v46 }
 0x2dc   :  { %v512_v49 = vmax.f32 %v510_v47, 0.0  ;;  %v511_v50 = vadd.f32 %v507_v48, %v682_v1 }
 0x2de   :  { %514 = vst [vmem:[%s871_s7] sm:$0xff] %v512_v49  ;;  %v513_v51 = vmax.f32 %v511_v50, 0.0 }
 0x2e0   :  { %515 = vst [vmem:[%s871_s7 + $0x8] sm:$0xff] %v513_v51 }

</bundles_post_ra>
